<compile_context>
chip_gen: v7x
topology: tpu7x:2x2x1
jax: 0.10.0
libtpu: 0.0.40
codegen_flags: <defaults>
</compile_context>

<pallas_src>
import jax
import jax.numpy as jnp
import numpy as np
from jax.experimental import pallas as pl
from jax.experimental.pallas import tpu as pltpu

_LANE = 128


def _sdpa_kernel(q_ref, k_ref, v_ref, o_ref):
    # q_ref: (TB, 1, D); k_ref / v_ref / o_ref: (TB, L, D) — TB batch elements per grid step.
    q = q_ref[...].astype(jnp.float32)            # (TB, 1, D)
    k = k_ref[...].astype(jnp.float32)            # (TB, L, D)
    v = v_ref[...].astype(jnp.float32)            # (TB, L, D)
    # TODO(synk): for bf16 inputs on v6e/v7x, do q*k in bf16 (f32-accumulate the reduce only)
    # to halve VALU work / vreg pressure; kept full f32 here to match PyTorch numerics exactly.

    d = q_ref.shape[-1]
    inv_sqrt_d = jnp.float32(1.0 / (float(d) ** 0.5))

    # Attention signal: per-key inner product over D (lane axis) on the VPU/XLU, f32 accumulate.
    # Scores stay in (TB, L, 1) layout so the softmax over L (sublanes) and the final broadcast
    # over D require no transposes / relayouts.
    s = jnp.sum(q * k, axis=-1, keepdims=True) * inv_sqrt_d   # (TB, L, 1)

    # Numerically-stable softmax over the key axis L; exact divide so rows sum to 1.
    m = jnp.max(s, axis=1, keepdims=True)         # (TB, 1, 1)
    e = jnp.exp(s - m)                            # (TB, L, 1)
    p = e / jnp.sum(e, axis=1, keepdims=True)     # (TB, L, 1)

    # Weighted values: multiply in f32, cast only the product to the output dtype.
    o_ref[...] = (p * v).astype(o_ref.dtype)


def _sublane_multiple(itemsize):
    # Sublane packing multiple for the second-minor dim: f32 -> 8, bf16 -> 16, int8/fp8 -> 32.
    return {4: 8, 2: 16, 1: 32}.get(int(itemsize), 8)


def _padded_per_batch_bytes(L, D, q_dtype, k_dtype, v_dtype, o_dtype):
    """VMEM bytes per batch element of the q/k/v/out tiles AFTER Mosaic (sublane, lane) padding."""
    d_pad = pl.cdiv(D, _LANE) * _LANE
    q_item = np.dtype(q_dtype).itemsize
    total = _sublane_multiple(q_item) * d_pad * q_item   # q's size-1 row pads to a sublane group
    for dt in (k_dtype, v_dtype, o_dtype):
        item = np.dtype(dt).itemsize
        sub = _sublane_multiple(item)
        l_pad = pl.cdiv(L, sub) * sub
        total += l_pad * d_pad * item
    return total


def _physical_vmem_bytes():
    try:
        cap = getattr(pltpu.get_tpu_info(), "vmem_capacity_bytes", None)
        if cap:
            return int(cap)
    except Exception:
        pass
    return 64 * 1024 * 1024   # conservative fallback (v7x-sized VMEM)


def _tensorcores_per_device():
    """Best-effort detection of dual-TensorCore devices (megacore v4/v5p, v7x)."""
    try:
        kind = jax.devices()[0].device_kind.lower()
    except Exception:
        return 1
    if any(tag in kind for tag in ("v4", "v5p", "v7", "7x")):
        return 2
    return 1


def _plan_tiling(B, L, D, q_dtype, k_dtype, v_dtype, o_dtype):
    """Pick the batch tile TB, grid size, and an explicit VMEM limit for this chip."""
    physical = _physical_vmem_bytes()
    vmem_limit = (physical * 3) // 4                  # leave headroom for Mosaic internals
    per_step_budget = int(vmem_limit * 0.45)          # BlockSpec double-buffers every tile (~2x live)

    per_batch = _padded_per_batch_bytes(L, D, q_dtype, k_dtype, v_dtype, o_dtype)
    target = max(1, min(B, per_step_budget // per_batch))

    cores = _tensorcores_per_device()
    if cores > 1 and B >= cores:
        # Dual-TC chips: keep at least `cores` grid steps so both cores (each with its own
        # DMA path to HBM) get work on this memory-bound kernel.
        target = min(target, B // cores)
    # Single-TC chips (v5e/v6e): the grid is a serial loop — one maximal step is best.

    # Prefer an exact divisor of B within 2x of the target (avoids a ragged last block);
    # otherwise accept a partial final block via a cdiv grid (Pallas masks the overhang).
    tb = target
    for cand in range(target, max(1, target // 2) - 1, -1):
        if B % cand == 0:
            tb = cand
            break
    grid_b = pl.cdiv(B, tb)
    return tb, grid_b, vmem_limit


def scaled_dot_product_attention(query, keys, values):
    """query: [B, D], keys: [B, L, D], values: [B, L, D] -> [B, L, D]."""
    B, L, D = keys.shape
    assert query.shape == (B, D)
    assert values.shape == (B, L, D)

    out_dtype = values.dtype
    tb, grid_b, vmem_limit = _plan_tiling(
        B, L, D, query.dtype, keys.dtype, values.dtype, out_dtype)

    q3 = query.reshape(B, 1, D)   # glue reshape outside the kernel

    # TODO(synk): for production shapes with D < 128, present keys/values/out as lane-dense
    # (B, L*D) slabs and do the segmented-over-D reduce / p-broadcast with small constant
    # block-diagonal MXU matmuls to eliminate masked partial stores and 4x VMEM padding.

    bytes_accessed = (
        B * D * np.dtype(query.dtype).itemsize
        + B * L * D * np.dtype(keys.dtype).itemsize
        + B * L * D * np.dtype(values.dtype).itemsize
        + B * L * D * np.dtype(out_dtype).itemsize
    )
    cost = pl.CostEstimate(
        flops=3 * B * L * D,          # q.k reduce + p*v, softmax adds folded in
        transcendentals=B * L,        # exp
        bytes_accessed=bytes_accessed,
    )

    return pl.pallas_call(
        _sdpa_kernel,
        out_shape=jax.ShapeDtypeStruct((B, L, D), out_dtype),
        grid_spec=pltpu.PrefetchScalarGridSpec(
            num_scalar_prefetch=0,
            grid=(grid_b,),
            in_specs=[
                pl.BlockSpec((tb, 1, D), lambda b: (b, 0, 0)),
                pl.BlockSpec((tb, L, D), lambda b: (b, 0, 0)),
                pl.BlockSpec((tb, L, D), lambda b: (b, 0, 0)),
            ],
            out_specs=pl.BlockSpec((tb, L, D), lambda b: (b, 0, 0)),
        ),
        compiler_params=pltpu.CompilerParams(
            dimension_semantics=("parallel",),
            vmem_limit_bytes=int(vmem_limit),
        ),
        cost_estimate=cost,
    )(q3, keys, values)


def _reference(query, keys, values):
    s = jnp.einsum("bd,bld->bl", query, keys) / jnp.sqrt(jnp.float32(keys.shape[-1]))
    p = jax.nn.softmax(s, axis=-1)
    return p[:, :, None] * values


if __name__ == "__main__":
    B, L, D = 8, 8, 32
    key = jax.random.PRNGKey(0)
    kq, kk, kv = jax.random.split(key, 3)

    query = jax.random.normal(kq, (B, D), dtype=jnp.float32)
    keys = jax.random.normal(kk, (B, L, D), dtype=jnp.float32)
    values = jax.random.normal(kv, (B, L, D), dtype=jnp.float32)

    out = jax.block_until_ready(scaled_dot_product_attention(query, keys, values))
    ref = _reference(query, keys, values)

    assert out.shape == (B, L, D)
    # Exact softmax (no approx reciprocal) => tight tolerance vs the pure-JAX reference.
    assert jnp.allclose(out, ref, atol=1e-4, rtol=1e-4), float(jnp.max(jnp.abs(out - ref)))

    print("KERNEL_OK")
</pallas_src>

<mosaic_0001>
module attributes {stable_mosaic.version = 11 : i64} {
  func.func @_sdpa_kernel(%arg0: i32, %arg1: memref<8x1x32xf32, #tpu.memory_space<vmem>>, %arg2: memref<8x8x32xf32, #tpu.memory_space<vmem>>, %arg3: memref<8x8x32xf32, #tpu.memory_space<vmem>>, %arg4: memref<8x8x32xf32, #tpu.memory_space<vmem>>) attributes {dimension_semantics = [#tpu.dimension_semantics<parallel>], iteration_bounds = array<i64: 1>, scalar_prefetch = 0 : i64, scratch_operands = 0 : i64, tpu.core_type = #tpu.core_type<tc>, window_params = [{transform_indices = @transform_0, window_bounds = array<i64: 8, 1, 32>}, {transform_indices = @transform_1, window_bounds = array<i64: 8, 8, 32>}, {transform_indices = @transform_2, window_bounds = array<i64: 8, 8, 32>}, {transform_indices = @transform_3, window_bounds = array<i64: 8, 8, 32>}]} {
    %c0 = arith.constant 0 : index
    %c0_0 = arith.constant 0 : index
    %c0_1 = arith.constant 0 : index
    %0 = vector.load %arg1[%c0, %c0_0, %c0_1] : memref<8x1x32xf32, #tpu.memory_space<vmem>>, vector<8x1x32xf32>
    %c0_2 = arith.constant 0 : index
    %c0_3 = arith.constant 0 : index
    %c0_4 = arith.constant 0 : index
    %1 = vector.load %arg2[%c0_2, %c0_3, %c0_4] : memref<8x8x32xf32, #tpu.memory_space<vmem>>, vector<8x8x32xf32>
    %c0_5 = arith.constant 0 : index
    %c0_6 = arith.constant 0 : index
    %c0_7 = arith.constant 0 : index
    %2 = vector.load %arg3[%c0_5, %c0_6, %c0_7] : memref<8x8x32xf32, #tpu.memory_space<vmem>>, vector<8x8x32xf32>
    %3 = vector.broadcast %0 : vector<8x1x32xf32> to vector<8x8x32xf32>
    %4 = arith.mulf %3, %1 : vector<8x8x32xf32>
    %cst = arith.constant dense<0.000000e+00> : vector<8x8xf32>
    %5 = vector.multi_reduction <add>, %4, %cst [2] : vector<8x8x32xf32> to vector<8x8xf32>
    %6 = vector.shape_cast %5 : vector<8x8xf32> to vector<8x8x1xf32>
    %cst_8 = arith.constant 0.176776692 : f32
    %7 = vector.broadcast %cst_8 : f32 to vector<8x8x1xf32>
    %8 = arith.mulf %6, %7 : vector<8x8x1xf32>
    %cst_9 = arith.constant dense<0xFF800000> : vector<8x1xf32>
    %9 = vector.multi_reduction <maximumf>, %8, %cst_9 [1] : vector<8x8x1xf32> to vector<8x1xf32>
    %10 = vector.shape_cast %9 : vector<8x1xf32> to vector<8x1x1xf32>
    %11 = vector.broadcast %10 : vector<8x1x1xf32> to vector<8x8x1xf32>
    %12 = arith.subf %8, %11 : vector<8x8x1xf32>
    %13 = math.exp %12 : vector<8x8x1xf32>
    %cst_10 = arith.constant dense<0.000000e+00> : vector<8x1xf32>
    %14 = vector.multi_reduction <add>, %13, %cst_10 [1] : vector<8x8x1xf32> to vector<8x1xf32>
    %15 = vector.shape_cast %14 : vector<8x1xf32> to vector<8x1x1xf32>
    %16 = vector.broadcast %15 : vector<8x1x1xf32> to vector<8x8x1xf32>
    %17 = arith.divf %13, %16 : vector<8x8x1xf32>
    %18 = vector.broadcast %17 : vector<8x8x1xf32> to vector<8x8x32xf32>
    %19 = arith.mulf %18, %2 : vector<8x8x32xf32>
    %c0_11 = arith.constant 0 : index
    %c0_12 = arith.constant 0 : index
    %c0_13 = arith.constant 0 : index
    %20 = vector.load %arg4[%c0_11, %c0_12, %c0_13] : memref<8x8x32xf32, #tpu.memory_space<vmem>>, vector<8x8x32xf32>
    tpu.vector_store %arg4[%c0_11, %c0_12, %c0_13], %19 {strides = array<i32>} : memref<8x8x32xf32, #tpu.memory_space<vmem>>, vector<8x8x32xf32>,
    return
  }
  func.func @transform_0(%arg0: i32) -> (i32, i32, i32) {
    %c0_i32 = arith.constant 0 : i32
    %c0_i32_0 = arith.constant 0 : i32
    %c0_i32_1 = arith.constant 0 : i32
    return %arg0, %c0_i32, %c0_i32_0 : i32, i32, i32
  }
  func.func @transform_1(%arg0: i32) -> (i32, i32, i32) {
    %c0_i32 = arith.constant 0 : i32
    %c0_i32_0 = arith.constant 0 : i32
    %c0_i32_1 = arith.constant 0 : i32
    return %arg0, %c0_i32, %c0_i32_0 : i32, i32, i32
  }
  func.func @transform_2(%arg0: i32) -> (i32, i32, i32) {
    %c0_i32 = arith.constant 0 : i32
    %c0_i32_0 = arith.constant 0 : i32
    %c0_i32_1 = arith.constant 0 : i32
    return %arg0, %c0_i32, %c0_i32_0 : i32, i32, i32
  }
  func.func @transform_3(%arg0: i32) -> (i32, i32, i32) {
    %c0_i32 = arith.constant 0 : i32
    %c0_i32_0 = arith.constant 0 : i32
    %c0_i32_1 = arith.constant 0 : i32
    return %arg0, %c0_i32, %c0_i32_0 : i32, i32, i32
  }
}

</mosaic_0001>

<bundles_post_ra>
// kernel: tpu_custom_call.1
= control target key start
LH: loop header
LB: loop body
LE: loop exit
PB: predicated region body
PF: predicated region fallthrough
CT: control target
= control target key end

     0   :  { %8 = vsyncpa [#allocation3], 0  ;;  %s622_s0 = inlined_call_operand.hbm [shape: f32[8,1,32], index: 0, kind: input, shape index: {}]   ;;  %s623_s1 = inlined_call_operand.hbm [shape: f32[8,8,32], index: 1, kind: input, shape index: {}]   ;;  %s624_s2 = inlined_call_operand.hbm [shape: f32[8,8,32], index: 2, kind: input, shape index: {}]   ;;  %s625_s3 = inlined_call_operand.hbm [shape: f32[8,8,32], index: 3, kind: output, shape index: {}]  }
   0x1   :  { %9 = vsyncpa [#allocation6], 0 }
   0x2   :  { %10 = vsyncpa [#allocation4], 0  ;;  %s481_s12 = smov [#allocation5]   ;;  %s387_s16 = scalar_lea.hbm %s623_s1, 1024 }
   0x3   :  { %s28_s13 = sshll.u32 %s481_s12, 4  ;;  %p388_p0 = scmp.ne.s32.totalorder %s623_s1, %s387_s16  ;;  %s29_s13 = int_to_ptr.vmem [resolvable:$true] %s28_s13 }
   0x4   :  { %p391_p1 = scmp.lt.u32.totalorder %s387_s16, %s623_s1 }
   0x6   :  { %p393_p2 = pnand %p391_p1, %p388_p0 }
   0x8   :  { %396 = shalt.err (!%p393_p2)
}
   0x9   :  { %s397_s21 = scalar_lea.vmem %s29_s13, 1024  ;;  %p402_p4 = scmp.lt.s32.totalorder %s29_s13, %s29_s13 }
   0xa   :  { %p398_p3 = scmp.ne.s32.totalorder %s29_s13, %s397_s21  ;;  %p403_p5 = scmp.lt.s32.totalorder %s397_s21, %s397_s21 }
   0xc   :  { %p404_p6 = por %p403_p5, %p402_p4 }
   0xe   :  { %p405_p7 = pnand %p404_p6, %p398_p3 }
  0x10   :  { %408 = shalt.err (!%p405_p7)
}
  0x11   :  { %s482_s22 = smov 128   ;;  %s483_s23 = smov 8  }
  0x12   :  { %34 = dma.hbm_to_vmem [thread:$0]  %s623_s1, 1024, %s29_s13, [#allocation6], %s482_s22, %s482_s22, %s483_s23  }
  0x13   :  { %s484_s26 = smov [#allocation2]   ;;  %s409_s30 = scalar_lea.hbm %s622_s0, 128 }
  0x14   :  { %s16_s27 = sshll.u32 %s484_s26, 4  ;;  %p410_p8 = scmp.ne.s32.totalorder %s622_s0, %s409_s30  ;;  %s17_s27 = int_to_ptr.vmem [resolvable:$true] %s16_s27 }
  0x15   :  { %p413_p9 = scmp.lt.u32.totalorder %s409_s30, %s622_s0 }
  0x17   :  { %p415_p10 = pnand %p413_p9, %p410_p8 }
  0x19   :  { %418 = shalt.err (!%p415_p10)
}
  0x1a   :  { %s419_s8 = scalar_lea.vmem %s17_s27, 128  ;;  %p424_p12 = scmp.lt.s32.totalorder %s17_s27, %s17_s27 }
  0x1b   :  { %p420_p11 = scmp.ne.s32.totalorder %s17_s27, %s419_s8  ;;  %p425_p13 = scmp.lt.s32.totalorder %s419_s8, %s419_s8 }
  0x1d   :  { %p426_p0 = por %p425_p13, %p424_p12 }
  0x1f   :  { %p427_p1 = pnand %p426_p0, %p420_p11 }
  0x21   :  { %430 = shalt.err (!%p427_p1)
}
  0x22   :  { %s485_s1 = smov 16   ;;  %s486_s9 = smov 1  }
  0x23   :  { %22 = dma.hbm_to_vmem [thread:$0]  %s622_s0, 128, %s17_s27, [#allocation3], %s485_s1, %s485_s1, %s486_s9  }
  0x24   :  { %s487_s12 = smov [#allocation7]   ;;  %s431_s16 = scalar_lea.hbm %s624_s2, 1024 }
  0x25   :  { %s40_s13 = sshll.u32 %s487_s12, 4  ;;  %p432_p2 = scmp.ne.s32.totalorder %s624_s2, %s431_s16  ;;  %s41_s13 = int_to_ptr.vmem [resolvable:$true] %s40_s13 }
  0x26   :  { %p435_p3 = scmp.lt.u32.totalorder %s431_s16, %s624_s2 }
  0x28   :  { %p437_p4 = pnand %p435_p3, %p432_p2 }
  0x2a   :  { %440 = shalt.err (!%p437_p4)
}
  0x2b   :  { %s441_s21 = scalar_lea.vmem %s41_s13, 1024  ;;  %p446_p6 = scmp.lt.s32.totalorder %s41_s13, %s41_s13 }
  0x2c   :  { %p442_p5 = scmp.ne.s32.totalorder %s41_s13, %s441_s21  ;;  %p447_p7 = scmp.lt.s32.totalorder %s441_s21, %s441_s21 }
  0x2e   :  { %p448_p8 = por %p447_p7, %p446_p6 }
  0x30   :  { %p449_p9 = pnand %p448_p8, %p442_p5 }
  0x32   :  { %452 = shalt.err (!%p449_p9)
}
  0x33   :  { %46 = dma.hbm_to_vmem [thread:$0]  %s624_s2, 1024, %s41_s13, [#allocation6], %s482_s22, %s482_s22, %s483_s23  }
  0x34   :  { %475 = dma.done.wait [#allocation3], 128  }
  0x35   :  { %476 = vsyncadd [#allocation3], 4294967168 }
  0x36   :  { %477 = dma.done.wait [#allocation6], 2048  }
  0x37   :  { %478 = vsyncadd [#allocation6], 4294965248  ;;  %v341_v0 = vld [vmem:[#allocation2 + $0x2] ss:$0 sm:$0xff]  ;;  %v66_v1 = vld [vmem:[#allocation5 + $0x10] sm:$0xff]  ;;  %vm136_vm0 = vcmask 261120  }
  0x38   :  { %v339_v2 = vld [vmem:[#allocation2] ss:$0 sm:$0xff]  ;;  %v130_v3 = vmul.f32 %v341_v0, %v66_v1  ;;  %v64_v4 = vld [vmem:[#allocation5] sm:$0xff]  ;;  %v342_v5 = vld [vmem:[#allocation2 + $0x3] ss:$0 sm:$0xff]  ;;  %s488_s2 = smov [#allocation8]  }
  0x39   :  { %v67_v6 = vld [vmem:[#allocation5 + $0x18] sm:$0xff]  ;;  %v128_v7 = vmul.f32 %v339_v2, %v64_v4  ;;  %v65_v10 = vld [vmem:[#allocation5 + $0x8] sm:$0xff]  ;;  %v68_v16 = vld [vmem:[#allocation5 + $0x20] sm:$0xff]  ;;  %s326_s25 = sshll.u32 %s488_s2, 4  ;;  %s327_s25 = int_to_ptr.vmem [resolvable:$true] %s326_s25 }
  0x3a   :  { %v131_v8 = vmul.f32 %v342_v5, %v67_v6  ;;  %v340_v9 = vld [vmem:[#allocation2 + $0x1] ss:$0 sm:$0xff]  ;;  %v344_v11 = vld [vmem:[#allocation2 + $0x5] ss:$0 sm:$0xff]  ;;  %v143_v12 = vsel %vm136_vm0, %v130_v3, 0.0  ;;  %v69_v14 = vld [vmem:[#allocation5 + $0x28] sm:$0xff]  ;;  %p458_p11 = scmp.lt.s32.totalorder %s327_s25, %s327_s25 }
  0x3b   :  { %v129_v13 = vmul.f32 %v340_v9, %v65_v10  ;;  %v343_v15 = vld [vmem:[#allocation2 + $0x4] ss:$0 sm:$0xff]  ;;  %144 = vadd.xlane.f32.xlu1 %v143_v12  ;;  %v137_v17 = vsel %vm136_vm0, %v128_v7, 0.0  ;;  %v133_v19 = vmul.f32 %v344_v11, %v69_v14  ;;  %v346_v22 = vld [vmem:[#allocation2 + $0x7] ss:$0 sm:$0xff]  ;;  %v70_v25 = vld [vmem:[#allocation5 + $0x30] sm:$0xff] }
  0x3c   :  { %138 = vadd.xlane.f32.xlu0 %v137_v17  ;;  %v146_v18 = vsel %vm136_vm0, %v131_v8, 0.0  ;;  %v132_v21 = vmul.f32 %v343_v15, %v68_v16  ;;  %v71_v23 = vld [vmem:[#allocation5 + $0x38] sm:$0xff]  ;;  %s453_s26 = scalar_lea.vmem %s327_s25, 1024 }
  0x3d   :  { %v140_v20 = vsel %vm136_vm0, %v129_v13, 0.0  ;;  %v345_v24 = vld [vmem:[#allocation2 + $0x6] ss:$0 sm:$0xff]  ;;  %v152_v26 = vsel %vm136_vm0, %v133_v19, 0.0  ;;  %v135_v27 = vmul.f32 %v346_v22, %v71_v23  ;;  %p454_p10 = scmp.ne.s32.totalorder %s327_s25, %s453_s26  ;;  %p459_p12 = scmp.lt.s32.totalorder %s453_s26, %s453_s26 }
  0x3e   :  { %v149_v28 = vsel %vm136_vm0, %v132_v21, 0.0  ;;  %v134_v29 = vmul.f32 %v345_v24, %v70_v25 }
  0x3f   :  { %147 = vadd.xlane.f32.xlu1 %v146_v18  ;;  %v158_v30 = vsel %vm136_vm0, %v135_v27, 0.0  ;;  %p460_p13 = por %p459_p12, %p458_p11 }
  0x40   :  { %141 = vadd.xlane.f32.xlu0 %v140_v20  ;;  %v155_v31 = vsel %vm136_vm0, %v134_v29, 0.0 }
  0x41   :  { %p461_p0 = pnand %p460_p13, %p454_p10 }
  0x43   :  { %153 = vadd.xlane.f32.xlu1 %v152_v26 }
  0x44   :  { %150 = vadd.xlane.f32.xlu0 %v149_v28 }
  0x47   :  { %159 = vadd.xlane.f32.xlu1 %v158_v30 }
  0x48   :  { %156 = vadd.xlane.f32.xlu0 %v155_v31 }
  0xc8   :  { %v145_v32 = vpop.xlane.xlu1 %144 }
  0xc9   :  { %v163_v33 = vmul.f32 0.17677669, %v145_v32  ;;  %v139_v34 = vpop.xlane.xlu0 %138 }
  0xca   :  { %v161_v35 = vmul.f32 0.17677669, %v139_v34 }
  0xcb   :  { %v181_v36 = vrot.slane %v163_v33, 4 }
  0xcc   :  { %v169_v37 = vrot.slane %v161_v35, 4  ;;  %v148_v38 = vpop.xlane.xlu1 %147 }
  0xcd   :  { %v182_v39 = vmax.f32 %v163_v33, %v181_v36  ;;  %v164_v40 = vmul.f32 0.17677669, %v148_v38  ;;  %v142_v41 = vpop.xlane.xlu0 %141 }
  0xce   :  { %v170_v42 = vmax.f32 %v161_v35, %v169_v37  ;;  %v162_v43 = vmul.f32 0.17677669, %v142_v41 }
  0xcf   :  { %v183_v44 = vrot.slane %v182_v39, 2  ;;  %v187_v45 = vrot.slane %v164_v40, 4 }
  0xd0   :  { %v171_v46 = vrot.slane %v170_v42, 2  ;;  %v175_v47 = vrot.slane %v162_v43, 4  ;;  %v154_v48 = vpop.xlane.xlu1 %153 }
  0xd1   :  { %v184_v49 = vmax.f32 %v182_v39, %v183_v44  ;;  %v188_v50 = vmax.f32 %v164_v40, %v187_v45  ;;  %v166_v51 = vmul.f32 0.17677669, %v154_v48  ;;  %v151_v52 = vpop.xlane.xlu0 %150 }
  0xd2   :  { %v172_v53 = vmax.f32 %v170_v42, %v171_v46  ;;  %v176_v54 = vmax.f32 %v162_v43, %v175_v47  ;;  %v165_v55 = vmul.f32 0.17677669, %v151_v52 }
  0xd3   :  { %v185_v56 = vrot.slane %v184_v49, 1  ;;  %v189_v57 = vrot.slane %v188_v50, 2  ;;  %v199_v58 = vrot.slane %v166_v51, 4 }
  0xd4   :  { %v173_v59 = vrot.slane %v172_v53, 1  ;;  %v177_v60 = vrot.slane %v176_v54, 2  ;;  %v193_v61 = vrot.slane %v165_v55, 4  ;;  %v160_v62 = vpop.xlane.xlu1 %159 }
  0xd5   :  { %v186_v63 = vmax.f32 %v184_v49, %v185_v56  ;;  %v190_v0 = vmax.f32 %v188_v50, %v189_v57  ;;  %v200_v1 = vmax.f32 %v166_v51, %v199_v58  ;;  %v168_v2 = vmul.f32 0.17677669, %v160_v62  ;;  %v157_v3 = vpop.xlane.xlu0 %156 }
  0xd6   :  { %v174_v4 = vmax.f32 %v172_v53, %v173_v59  ;;  %v178_v5 = vmax.f32 %v176_v54, %v177_v60  ;;  %v194_v6 = vmax.f32 %v165_v55, %v193_v61  ;;  %v167_v7 = vmul.f32 0.17677669, %v157_v3 }
  0xd7   :  { %v219_v8 = vsub.f32 %v163_v33, %v186_v63  ;;  %v191_v9 = vrot.slane %v190_v0, 1  ;;  %v201_v10 = vrot.slane %v200_v1, 2  ;;  %v211_v11 = vrot.slane %v168_v2, 4 }
  0xd8   :  { %v217_v12 = vsub.f32 %v161_v35, %v174_v4  ;;  %v179_v13 = vrot.slane %v178_v5, 1  ;;  %v195_v14 = vrot.slane %v194_v6, 2  ;;  %v205_v15 = vrot.slane %v167_v7, 4 }
  0xd9   :  { %v229_v16 = vmul.f32 1.442695, %v219_v8  ;;  %v192_v17 = vmax.f32 %v190_v0, %v191_v9  ;;  %v202_v18 = vmax.f32 %v200_v1, %v201_v10  ;;  %v212_v19 = vmax.f32 %v168_v2, %v211_v11 }
  0xda   :  { %v225_v20 = vmul.f32 1.442695, %v217_v12  ;;  %v180_v21 = vmax.f32 %v178_v5, %v179_v13  ;;  %v196_v22 = vmax.f32 %v194_v6, %v195_v14  ;;  %v206_v23 = vmax.f32 %v167_v7, %v205_v15 }
  0xdb   :  { %355 = vpow2.f32 %v229_v16  ;;  %v220_v24 = vsub.f32 %v164_v40, %v192_v17  ;;  %v203_v25 = vrot.slane %v202_v18, 1  ;;  %v213_v26 = vrot.slane %v212_v19, 2 }
  0xdc   :  { %357 = vpow2.f32 %v225_v20  ;;  %v218_v27 = vsub.f32 %v162_v43, %v180_v21  ;;  %v197_v28 = vrot.slane %v196_v22, 1  ;;  %v207_v29 = vrot.slane %v206_v23, 2 }
  0xdd   :  { %v231_v30 = vmul.f32 1.442695, %v220_v24  ;;  %v204_v31 = vmax.f32 %v202_v18, %v203_v25  ;;  %v214_v32 = vmax.f32 %v212_v19, %v213_v26 }
  0xde   :  { %v227_v33 = vmul.f32 1.442695, %v218_v27  ;;  %v198_v34 = vmax.f32 %v196_v22, %v197_v28  ;;  %v208_v35 = vmax.f32 %v206_v23, %v207_v29 }
  0xdf   :  { %359 = vpow2.f32 %v231_v30  ;;  %v222_v36 = vsub.f32 %v166_v51, %v204_v31  ;;  %v215_v37 = vrot.slane %v214_v32, 1 }
  0xe0   :  { %361 = vpow2.f32 %v227_v33  ;;  %v221_v38 = vsub.f32 %v165_v55, %v198_v34  ;;  %v209_v39 = vrot.slane %v208_v35, 1 }
  0xe1   :  { %v235_v41 = vmul.f32 1.442695, %v222_v36  ;;  %v216_v40 = vmax.f32 %v214_v32, %v215_v37 }
  0xe2   :  { %v233_v42 = vmul.f32 1.442695, %v221_v38  ;;  %v210_v44 = vmax.f32 %v208_v35, %v209_v39 }
  0xe3   :  { %363 = vpow2.f32 %v235_v41  ;;  %v224_v43 = vsub.f32 %v168_v2, %v216_v40  ;;  %v74_v41 = vld [vmem:[#allocation7 + $0x10] sm:$0xff] }
  0xe4   :  { %365 = vpow2.f32 %v233_v42  ;;  %v223_v45 = vsub.f32 %v167_v7, %v210_v44 }
  0xe5   :  { %v559_v46 = vpop.eup %355  ;;  %v239_v47 = vmul.f32 1.442695, %v224_v43  ;;  %v72_v43 = vld [vmem:[#allocation7] sm:$0xff] }
  0xe6   :  { %v561_v48 = vpop.eup %357  ;;  %v253_v49 = vrot.slane %v559_v46, 4  ;;  %v237_v50 = vmul.f32 1.442695, %v223_v45 }
  0xe7   :  { %v241_v51 = vrot.slane %v561_v48, 4  ;;  %367 = vpow2.f32 %v239_v47 }
  0xe8   :  { %v254_v52 = vadd.f32 %v559_v46, %v253_v49  ;;  %369 = vpow2.f32 %v237_v50  ;;  %v75_v50 = vld [vmem:[#allocation7 + $0x18] sm:$0xff] }
  0xe9   :  { %v566_v53 = vpop.eup %359  ;;  %v242_v54 = vadd.f32 %v561_v48, %v241_v51 }
  0xea   :  { %v569_v55 = vpop.eup %361  ;;  %v255_v56 = vrot.slane %v254_v52, 2  ;;  %v259_v57 = vrot.slane %v566_v53, 4 }
  0xeb   :  { %v243_v58 = vrot.slane %v242_v54, 2  ;;  %v247_v59 = vrot.slane %v569_v55, 4 }
  0xec   :  { %v256_v60 = vadd.f32 %v255_v56, %v254_v52  ;;  %v260_v61 = vadd.f32 %v566_v53, %v259_v57  ;;  %v73_v56 = vld [vmem:[#allocation7 + $0x8] sm:$0xff] }
  0xed   :  { %v574_v62 = vpop.eup %363  ;;  %v244_v63 = vadd.f32 %v243_v58, %v242_v54  ;;  %v248_v0 = vadd.f32 %v569_v55, %v247_v59  ;;  %v77_v59 = vld [vmem:[#allocation7 + $0x28] sm:$0xff] }
  0xee   :  { %v577_v1 = vpop.eup %365  ;;  %v257_v2 = vrot.slane %v256_v60, 1  ;;  %v261_v3 = vrot.slane %v260_v61, 2  ;;  %v271_v4 = vrot.slane %v574_v62, 4 }
  0xef   :  { %v245_v5 = vrot.slane %v244_v63, 1  ;;  %v249_v6 = vrot.slane %v248_v0, 2  ;;  %v265_v7 = vrot.slane %v577_v1, 4 }
  0xf0   :  { %v258_v8 = vadd.f32 %v257_v2, %v256_v60  ;;  %v262_v9 = vadd.f32 %v261_v3, %v260_v61  ;;  %v272_v10 = vadd.f32 %v574_v62, %v271_v4  ;;  %v79_v3 = vld [vmem:[#allocation7 + $0x38] sm:$0xff] }
  0xf1   :  { %v582_v11 = vpop.eup %367  ;;  %v246_v12 = vadd.f32 %v245_v5, %v244_v63  ;;  %v250_v13 = vadd.f32 %v249_v6, %v248_v0  ;;  %v266_v14 = vadd.f32 %v577_v1, %v265_v7  ;;  %v76_v63 = vld [vmem:[#allocation7 + $0x20] sm:$0xff]  ;;  %v78_v6 = vld [vmem:[#allocation7 + $0x30] sm:$0xff] }
  0xf2   :  { %v585_v15 = vpop.eup %369  ;;  %371 = vrcp.f32 %v258_v8  ;;  %v263_v16 = vrot.slane %v262_v9, 1  ;;  %v273_v17 = vrot.slane %v272_v10, 2  ;;  %v283_v18 = vrot.slane %v582_v11, 4 }
  0xf3   :  { %373 = vrcp.f32 %v246_v12  ;;  %v251_v19 = vrot.slane %v250_v13, 1  ;;  %v267_v20 = vrot.slane %v266_v14, 2  ;;  %v277_v21 = vrot.slane %v585_v15, 4 }
  0xf4   :  { %v264_v22 = vadd.f32 %v263_v16, %v262_v9  ;;  %v274_v23 = vadd.f32 %v273_v17, %v272_v10  ;;  %v284_v24 = vadd.f32 %v582_v11, %v283_v18 }
  0xf5   :  { %v252_v25 = vadd.f32 %v251_v19, %v250_v13  ;;  %v268_v26 = vadd.f32 %v267_v20, %v266_v14  ;;  %v278_v27 = vadd.f32 %v585_v15, %v277_v21 }
  0xf6   :  { %375 = vrcp.f32 %v264_v22  ;;  %v275_v28 = vrot.slane %v274_v23, 1  ;;  %v285_v29 = vrot.slane %v284_v24, 2 }
  0xf7   :  { %377 = vrcp.f32 %v252_v25  ;;  %v269_v30 = vrot.slane %v268_v26, 1  ;;  %v279_v31 = vrot.slane %v278_v27, 2 }
  0xf8   :  { %v276_v32 = vadd.f32 %v275_v28, %v274_v23  ;;  %v286_v33 = vadd.f32 %v285_v29, %v284_v24 }
  0xf9   :  { %v270_v34 = vadd.f32 %v269_v30, %v268_v26  ;;  %v280_v35 = vadd.f32 %v279_v31, %v278_v27 }
  0xfa   :  { %379 = vrcp.f32 %v276_v32  ;;  %v287_v36 = vrot.slane %v286_v33, 1 }
  0xfb   :  { %381 = vrcp.f32 %v270_v34  ;;  %v281_v37 = vrot.slane %v280_v35, 1 }
  0xfc   :  { %v372_v38 = vpop.eup %371  ;;  %v288_v39 = vadd.f32 %v287_v36, %v286_v33 }
  0xfd   :  { %v374_v40 = vpop.eup %373  ;;  %v294_v42 = vmul.f32 %v372_v38, %v559_v46  ;;  %v282_v44 = vadd.f32 %v281_v37, %v280_v35 }
  0xfe   :  { %v290_v45 = vmul.f32 %v374_v40, %v561_v48  ;;  %383 = vrcp.f32 %v288_v39 }
  0xff   :  { %385 = vrcp.f32 %v282_v44  ;;  %v307_v47 = vmul.f32 %v294_v42, %v74_v41 }
 0x100   :  { %v376_v49 = vpop.eup %375  ;;  %v305_v51 = vmul.f32 %v290_v45, %v72_v43 }
 0x101   :  { %v378_v52 = vpop.eup %377  ;;  %v296_v54 = vmul.f32 %v376_v49, %v566_v53  ;;  %315 = vst.msk [vmem:[#allocation8 + $0x10] sm:$0xff] %vm136_vm0, %v307_v47 }
 0x102   :  { %v292_v57 = vmul.f32 %v378_v52, %v569_v55  ;;  %313 = vst.msk [vmem:[#allocation8] sm:$0xff] %vm136_vm0, %v305_v51 }
 0x103   :  { %v308_v46 = vmul.f32 %v296_v54, %v75_v50 }
 0x104   :  { %v380_v58 = vpop.eup %379  ;;  %v306_v48 = vmul.f32 %v292_v57, %v73_v56 }
 0x105   :  { %v382_v60 = vpop.eup %381  ;;  %v300_v61 = vmul.f32 %v380_v58, %v574_v62  ;;  %316 = vst.msk [vmem:[#allocation8 + $0x18] sm:$0xff] %vm136_vm0, %v308_v46 }
 0x106   :  { %v298_v0 = vmul.f32 %v382_v60, %v577_v1  ;;  %314 = vst.msk [vmem:[#allocation8 + $0x8] sm:$0xff] %vm136_vm0, %v306_v48 }
 0x107   :  { %v310_v53 = vmul.f32 %v300_v61, %v77_v59 }
 0x108   :  { %v384_v2 = vpop.eup %383  ;;  %v309_v55 = vmul.f32 %v298_v0, %v76_v63 }
 0x109   :  { %v386_v4 = vpop.eup %385  ;;  %v304_v5 = vmul.f32 %v384_v2, %v582_v11  ;;  %318 = vst.msk [vmem:[#allocation8 + $0x28] sm:$0xff] %vm136_vm0, %v310_v53 }
 0x10a   :  { %v302_v62 = vmul.f32 %v386_v4, %v585_v15  ;;  %317 = vst.msk [vmem:[#allocation8 + $0x20] sm:$0xff] %vm136_vm0, %v309_v55 }
 0x10b   :  { %v312_v7 = vmul.f32 %v304_v5, %v79_v3 }
 0x10c   :  { %v311_v1 = vmul.f32 %v302_v62, %v78_v6 }
 0x10d   :  { %320 = vst.msk [vmem:[#allocation8 + $0x38] sm:$0xff] %vm136_vm0, %v312_v7 }
 0x10e   :  { %319 = vst.msk [vmem:[#allocation8 + $0x30] sm:$0xff] %vm136_vm0, %v311_v1 }
 0x10f   :  { %464 = shalt.err (!%p461_p0)
}
 0x110   :  { %s465_s29 = scalar_lea.hbm %s625_s3, 1024 }
 0x111   :  { %p466_p1 = scmp.ne.s32.totalorder %s625_s3, %s465_s29  ;;  %p469_p2 = scmp.lt.u32.totalorder %s465_s29, %s625_s3 }
 0x113   :  { %p471_p3 = pnand %p469_p2, %p466_p1 }
 0x115   :  { %474 = shalt.err (!%p471_p3)
}
 0x116   :  { %332 = dma.vmem_to_hbm [thread:$0]  %s327_s25, 1024, %s625_s3, [#allocation4], %s482_s22, %s482_s22, %s483_s23  }
 0x117   :  { %479 = dma.done.wait [#allocation4], 1024  }
 0x118   :  { %480 = vsyncadd [#allocation4], 4294966272 }
 0x119   :  { %336 = vsyncpa [#allocation3], 1 }
 0x11a   :  { %337 = vsyncpa [#allocation6], 1 }
 0x11b   :  { %338 = vsyncpa [#allocation4], 1 }

</bundles_post_ra>
